<compile_context>
chip_gen: v7x
topology: tpu7x:2x2x1
jax: 0.10.0
libtpu: 0.0.40
codegen_flags: <defaults>
</compile_context>

<pallas_src>
import functools
import math

import jax
import jax.numpy as jnp
import numpy as np
from jax.experimental import pallas as pl
from jax.experimental.pallas import tpu as pltpu


# ------------------------------- kernel --------------------------------------
def _rmsnorm_kernel(x_ref, w_ref, o_ref, *, eps):
    x = x_ref[...]                                    # [bm, D], input dtype
    xf = x.astype(jnp.float32)                        # stats always in f32
    ms = jnp.mean(xf * xf, axis=-1, keepdims=True)    # mean(x^2) per row
    inv = jax.lax.rsqrt(ms + eps)                     # EUP rsqrt (free slot)
    normed = (xf * inv).astype(x.dtype)               # `.type_as(x)`
    # `normed * weight`: dtype promotion mirrors torch (e.g. bf16*f32 -> f32).
    o_ref[...] = (normed * w_ref[...]).astype(o_ref.dtype)


# --------------------------- block-size selection -----------------------------
def _sublane_tile(itemsize):
    # Whole packed-vreg sublane tiles: f32 -> 8, bf16 -> 16, int8/fp8 -> 32.
    return max(8, 32 // max(int(itemsize), 1))


def _vmem_targets():
    """(target input-block bytes, VMEM limit budget) per TPU generation."""
    target, budget = 4 << 20, 24 << 20                 # v5e / v6e default
    try:
        cap = getattr(pltpu.get_tpu_info(), "vmem_capacity_bytes", None)
        if cap is not None and cap <= (64 << 20):      # v7x: 64 MiB VMEM,
            target, budget = 6 << 20, 30 << 20         # ~3.2 TB/s HBM
    except Exception:
        pass
    return target, budget


def _pick_block_rows(M, D, in_itemsize, out_itemsize,
                     target_block_bytes, vmem_budget_bytes):
    """Row tile sized by bytes, sublane-aligned, keeping >=4 grid steps."""
    sub = _sublane_tile(in_itemsize)
    if M <= sub:
        return M                                       # one full-extent block

    def align(rows):
        return max(sub, (rows // sub) * sub)

    # Rows giving ~target_block_bytes of *input* per block (HBM-BW bound).
    bm = align(target_block_bytes // (D * in_itemsize))
    # Rows keeping double-buffered in+out tiles inside the VMEM budget
    # (reserve ~4 MiB headroom for the weight tile / compiler scratch).
    per_row = 2 * D * (in_itemsize + out_itemsize)
    bm = min(bm, align((vmem_budget_bytes - (4 << 20)) // per_row))
    # Keep >=4 (even) grid steps for mid/large M so read / compute / writeback
    # overlap and v7x shards rows across both TensorCores.
    if M // 4 >= sub:
        bm = min(bm, align(M // 4))
    else:
        bm = sub                                       # small M: minimum tile
    return bm


# ------------------------------- wrapper --------------------------------------
def rmsnorm(x, weight, eps=1e-6):
    """RMSNorm over the last dim. x: [..., D], weight: [D]."""
    orig_shape = x.shape
    D = orig_shape[-1]
    assert weight.shape == (D,)
    M = int(math.prod(orig_shape[:-1])) if len(orig_shape) > 1 else 1

    out_dtype = jnp.promote_types(x.dtype, weight.dtype)   # torch promotion
    x2 = x.reshape(M, D)
    w2 = weight.reshape(1, D)

    in_item = x2.dtype.itemsize
    out_item = jnp.dtype(out_dtype).itemsize
    target_bytes, vmem_budget = _vmem_targets()
    bm = _pick_block_rows(M, D, in_item, out_item, target_bytes, vmem_budget)
    grid = (pl.cdiv(M, bm),)            # partial tail block: rows independent

    # Explicit scoped-VMEM request sized to the actual working set + headroom
    # (never below the 16 MiB default).
    working_set = 2 * bm * D * (in_item + out_item) + 4 * D * out_item
    vmem_limit = max(16 << 20, int(working_set) + (4 << 20))

    cost = pl.CostEstimate(
        flops=4 * M * D,                 # square + reduce + scale + weight mul
        transcendentals=M,               # one rsqrt per row
        bytes_accessed=M * D * in_item + M * D * out_item
        + D * weight.dtype.itemsize,
    )

    out = pl.pallas_call(
        functools.partial(_rmsnorm_kernel, eps=eps),
        out_shape=jax.ShapeDtypeStruct((M, D), out_dtype),
        grid=grid,
        in_specs=[
            pl.BlockSpec((bm, D), lambda i: (i, 0)),   # lane-dense row tile
            pl.BlockSpec((1, D), lambda i: (0, 0)),    # resident weight row
        ],
        out_specs=pl.BlockSpec((bm, D), lambda i: (i, 0)),
        compiler_params=pltpu.CompilerParams(
            dimension_semantics=("parallel",),         # megacore row sharding
            vmem_limit_bytes=vmem_limit),
        cost_estimate=cost,
    )(x2, w2)
    return out.reshape(orig_shape).astype(out_dtype)


# ---------------------------- pure-JAX reference ------------------------------
def rmsnorm_ref(x, weight, eps=1e-6):
    xf = x.astype(jnp.float32)
    n = xf * jax.lax.rsqrt(jnp.mean(xf * xf, axis=-1, keepdims=True) + eps)
    return n.astype(x.dtype) * weight


# ---------------------------------- main --------------------------------------
if __name__ == "__main__":
    key = jax.random.PRNGKey(0)
    kx, kw, kx2 = jax.random.split(key, 3)

    # Primary check: f32, lane-dense D, grid of 4 pipelined steps.
    B, S, D = 2, 128, 256
    x = jax.random.normal(kx, (B, S, D), jnp.float32)
    weight = 1.0 + 0.1 * jax.random.normal(kw, (D,), jnp.float32)

    fwd = jax.jit(rmsnorm)
    out = jax.block_until_ready(fwd(x, weight))
    assert out.shape == (B, S, D)
    np.testing.assert_allclose(np.asarray(out), np.asarray(rmsnorm_ref(x, weight)),
                               atol=1e-5, rtol=1e-5)

    # Secondary check: bf16 input with row count not divisible by the block
    # (exercises the partial tail block + dtype-aware alignment path).
    x_bf = jax.random.normal(kx2, (2, 100, D), jnp.float32).astype(jnp.bfloat16)
    out_bf = jax.block_until_ready(jax.jit(rmsnorm)(x_bf, weight))
    np.testing.assert_allclose(np.asarray(out_bf),
                               np.asarray(rmsnorm_ref(x_bf, weight)),
                               atol=2e-2, rtol=2e-2)

    print("KERNEL_OK")
</pallas_src>

<mosaic_0001>
module attributes {stable_mosaic.version = 11 : i64} {
  func.func @_rmsnorm_kernel(%arg0: i32, %arg1: memref<64x256xf32, #tpu.memory_space<vmem>>, %arg2: memref<1x256xf32, #tpu.memory_space<vmem>>, %arg3: memref<64x256xf32, #tpu.memory_space<vmem>>) attributes {dimension_semantics = [#tpu.dimension_semantics<parallel>], iteration_bounds = array<i64: 4>, scalar_prefetch = 0 : i64, scratch_operands = 0 : i64, tpu.core_type = #tpu.core_type<tc>, window_params = [{transform_indices = @transform_0, window_bounds = array<i64: 64, 256>}, {pipeline_mode = #tpu.pipeline_mode<synchronous>, transform_indices = @transform_1, window_bounds = array<i64: 1, 256>}, {transform_indices = @transform_2, window_bounds = array<i64: 64, 256>}]} {
    %c0 = arith.constant 0 : index
    %c0_0 = arith.constant 0 : index
    %0 = vector.load %arg1[%c0, %c0_0] : memref<64x256xf32, #tpu.memory_space<vmem>>, vector<64x256xf32>
    %1 = arith.mulf %0, %0 : vector<64x256xf32>
    %cst = arith.constant dense<0.000000e+00> : vector<64xf32>
    %2 = vector.multi_reduction <add>, %1, %cst [1] : vector<64x256xf32> to vector<64xf32>
    %3 = vector.shape_cast %2 : vector<64xf32> to vector<64x1xf32>
    %cst_1 = arith.constant 2.560000e+02 : f32
    %4 = vector.broadcast %cst_1 : f32 to vector<64x1xf32>
    %5 = arith.divf %3, %4 : vector<64x1xf32>
    %cst_2 = arith.constant 9.99999997E-7 : f32
    %6 = vector.broadcast %cst_2 : f32 to vector<64x1xf32>
    %7 = arith.addf %5, %6 : vector<64x1xf32>
    %8 = math.rsqrt %7 : vector<64x1xf32>
    %9 = vector.broadcast %8 : vector<64x1xf32> to vector<64x256xf32>
    %10 = arith.mulf %0, %9 : vector<64x256xf32>
    %c0_3 = arith.constant 0 : index
    %c0_4 = arith.constant 0 : index
    %11 = vector.load %arg2[%c0_3, %c0_4] : memref<1x256xf32, #tpu.memory_space<vmem>>, vector<1x256xf32>
    %12 = vector.broadcast %11 : vector<1x256xf32> to vector<64x256xf32>
    %13 = arith.mulf %10, %12 : vector<64x256xf32>
    %c0_5 = arith.constant 0 : index
    %c0_6 = arith.constant 0 : index
    %14 = vector.load %arg3[%c0_5, %c0_6] : memref<64x256xf32, #tpu.memory_space<vmem>>, vector<64x256xf32>
    tpu.vector_store %arg3[%c0_5, %c0_6], %13 {strides = array<i32>} : memref<64x256xf32, #tpu.memory_space<vmem>>, vector<64x256xf32>,
    return
  }
  func.func @transform_0(%arg0: i32) -> (i32, i32) {
    %c0_i32 = arith.constant 0 : i32
    %c0_i32_0 = arith.constant 0 : i32
    return %arg0, %c0_i32 : i32, i32
  }
  func.func @transform_1(%arg0: i32) -> (i32, i32) {
    %c0_i32 = arith.constant 0 : i32
    %c0_i32_0 = arith.constant 0 : i32
    %c0_i32_1 = arith.constant 0 : i32
    return %c0_i32, %c0_i32_0 : i32, i32
  }
  func.func @transform_2(%arg0: i32) -> (i32, i32) {
    %c0_i32 = arith.constant 0 : i32
    %c0_i32_0 = arith.constant 0 : i32
    return %arg0, %c0_i32 : i32, i32
  }
}

</mosaic_0001>

<bundles_post_ra>
// kernel: rmsnorm.1
= control target key start
LH: loop header
LB: loop body
LE: loop exit
PB: predicated region body
PF: predicated region fallthrough
CT: control target
= control target key end

     0   :  { %7 = vsyncpa [#allocation3], 0  ;;  %s903_s0 = inlined_call_operand.hbm [shape: f32[256,256], index: 0, kind: input, shape index: {}]   ;;  %s904_s1 = inlined_call_operand.vmem [shape: f32[1,256], index: 1, kind: input, shape index: {}]   ;;  %s905_s2 = inlined_call_operand.hbm [shape: f32[256,256], index: 2, kind: output, shape index: {}]  }
   0x1   :  { %9 = vsyncpa [#allocation3 + $0x1], 0 }
   0x2   :  { %10 = vsyncpa [#allocation4], 0 }
   0x3   :  { %12 = vsyncpa [#allocation4 + $0x1], 0  ;;  %s599_s9 = smov 0   ;;  %s601_s10 = smov 0  }
   0x4   :  { %s603_s11 = smov 0   ;;  %s605_s12 = smov 0  }
   0x5 LB: > { %s620_s13 = sadd.s32 4294967295, %s576_s12   ;;  %s394_s14 = sadd.s32 4294967294, %s576_s12   ;;  %s576_s12 = sphi %s605_s12, %s917_s12   ;;  %s572_s11 = sphi %s603_s11, %s916_s11   ;;  %s568_s10 = sphi %s601_s10, %s915_s10   ;;  %s564_s9 = sphi %s599_s9, %s914_s9  }
   0x6   : > { %s624_s15 = sadd.s32 1, %s576_s12   ;;  %s25_s16 = sadd.s32 1, %s572_s11 }
   0x7   : > { %s22_s17 = ssub.s32 %s576_s12, %s624_s15  ;;  %p32_p0 = scmp.ne.s32.totalorder %s572_s11, %s568_s10 }
   0x8   : > { %p23_p1 = scmp.eq.s32.totalorder %s22_s17, 0  ;;  %p33_p2 = scmp.eq.s32.totalorder %s576_s12, 0 }
   0x9   : > { %p38_p3 = scmp.ne.s32.totalorder %s568_s10, %s564_s9  ;;  %p39_p4 = scmp.eq.s32.totalorder %s620_s13, 0 }
   0xa   : > { %s636_s18 = scalar_select %p23_p1, %s572_s11, %s25_s16  }
   0xb   : > { %p638_p5 = por %p33_p2, %p32_p0  ;;  %p642_p6 = por %p39_p4, %p38_p3 }
   0xc   : > { %p83_p7 = scmp.eq.s32.totalorder %s620_s13, 3  ;;  %p89_p8 = scmp.eq.s32.totalorder %s394_s14, 3 }
   0xd   : > { %p426_p9 = scmp.lt.s32.totalorder %s576_s12, 4  ;;  %s112_s23 = sand.u32 1, %s572_s11  }
   0xe   : > { %p648_p10 = por %p83_p7, %p32_p0  ;;  %p652_p11 = por %p89_p8, %p38_p3 }
   0xf   : > { %s411_s24 = sshll.u32 %s576_s12, 11  ;;  %s397_s25 = sshll.u32 %s112_s23, 7 }
  0x10   : > { %s909_s21 = scalar_select %p648_p10, 1, 0 }
  0x11   : > { %s910_s22 = scalar_select %p652_p11, 1, 0 }
  0x12   : > { %s661_s28 = scalar_lea.hbm %s903_s0, %s411_s24  ;;  %s116_s29 = scalar_lea.vmem [#allocation2], %s397_s25 }
  0x13   : > { %s124_s30 = sshll.u32 %s116_s29, 4  ;;  %p665_p12 = pnand %p426_p9, %p638_p5  ;;  %s669_s30 = int_to_ptr.vmem [resolvable:$true] %s124_s30 }
  0x14   : > { %s671_s4 = scalar_lea.sflag [#allocation3], %s112_s23  ;;  %s480_s5 = scalar_lea.hbm %s661_s28, 2048 }
  0x15   : > { %p481_p13 = scmp.ne.s32.totalorder %s661_s28, %s480_s5  ;;  %p482_p0 = pneg %p665_p12 }
  0x16   : > { %s485_s8 = scalar_lea.hbm %s903_s0, 8192  ;;  %p486_p3 = scmp.lt.u32.totalorder %s661_s28, %s903_s0 }
  0x17   : > { %p483_p1 = pnand %p482_p0, %p481_p13  ;;  %p487_p4 = scmp.lt.u32.totalorder %s485_s8, %s480_s5 }
  0x18   : > { %p489_p7 = scmp.lt.u32.totalorder %s480_s5, %s661_s28 }
  0x19   : > { %p484_p2 = pneg %p483_p1  ;;  %p488_p5 = por %p487_p4, %p486_p3 }
  0x1b   : > { %p490_p8 = por %p489_p7, %p488_p5 }
  0x1d   : > { %p491_p9 = pnand %p490_p8, %p484_p2 }
  0x1f   : > { %494 = shalt.err (!%p491_p9)
}
  0x20   : > { %s495_s17 = scalar_lea.vmem %s669_s30, 2048  ;;  %s578_s19 = smov [#allocation2]  }
  0x21   : > { %p496_p13 = scmp.ne.s32.totalorder %s669_s30, %s495_s17  ;;  %s500_s23 = sshll.u32 %s578_s19, 4  ;;  %s501_s23 = int_to_ptr.vmem [resolvable:$false] %s500_s23 }
  0x22   : > { %s502_s24 = scalar_lea.vmem %s501_s23, 4096  ;;  %p503_p10 = scmp.lt.s32.totalorder %s669_s30, %s501_s23 }
  0x23   : > { %p498_p1 = pnand %p496_p13, %p482_p0  ;;  %p504_p3 = scmp.lt.s32.totalorder %s502_s24, %s495_s17 }
  0x25   : > { %p499_p11 = pneg %p498_p1  ;;  %p505_p4 = por %p504_p3, %p503_p10 }
  0x27   : > { %p506_p5 = pnand %p505_p4, %p499_p11 }
  0x29   : > { %509 = shalt.err (!%p506_p5)
}
  0x2a   : > { %s579_s25 = smov 256   ;;  %s580_s26 = smov 16  }
  0x2b   : > { %421 = dma.hbm_to_vmem [thread:$0]  (!%p665_p12), %s661_s28, 2048, %s669_s30, %s671_s4, %s579_s25, %s579_s25, %s580_s26  }
  0x2c   : > { %p401_p0 = scmp.ge.s32.totalorder %s576_s12, 1  ;;  %p132_p2 = scmp.lt.s32.totalorder %s576_s12, 5 }
  0x2e   : > { %p133_p7 = pnand %p401_p0, %p132_p2 }
  0x2f   : > { %s702_s27 = sand.u32 (!%p133_p7), 1, %s568_s10  }
  0x30   : > { %136 = sbr.rel (%p133_p7) target bundleno = 250 (0xfa), region = 28  ;;  %s402_s29 = sshll.u32 (!%p133_p7), %s702_s27, 7 }
  0x31   : > { %s139_s5 = scalar_lea.sflag (!%p133_p7), [#allocation3], %s702_s27  ;;  %s708_s6 = scalar_lea.vmem (!%p133_p7), [#allocation2], %s402_s29 }
  0x37   : > { %555 = dma.done.wait (%p642_p6), %s139_s5, 2048  }
  0x38   : > { %557 = vsyncadd (%p642_p6), %s139_s5, 4294965248  ;;  %v715_v0 = vld [vmem:[%s708_s6 + $0x20] sm:$0xff]  ;;  %v718_v1 = vld [vmem:[%s708_s6 + $0x28] sm:$0xff]  ;;  %v264_v43 = vlaneseq  ;;  %s811_s30 = scalar_lea.vmem [#allocation5], %s402_s29  ;;  %s413_s3 = sshll.u32 %s620_s13, 11 }
  0x39   : > { %v721_v2 = vld [vmem:[%s708_s6] sm:$0xff]  ;;  %v185_v3 = vmul.f32 %v715_v0, %v715_v0  ;;  %v186_v4 = vmul.f32 %v718_v1, %v718_v1  ;;  %v728_v5 = vld [vmem:[%s708_s6 + $0x8] sm:$0xff]  ;;  %v733_v7 = vld [vmem:[%s708_s6 + $0x30] sm:$0xff]  ;;  %s321_s4 = sshll.u32 %s811_s30, 4  ;;  %s852_s8 = scalar_lea.hbm %s905_s2, %s413_s3  ;;  %s854_s4 = int_to_ptr.vmem [resolvable:$true] %s321_s4 }
  0x3a   : > { %v181_v6 = vmul.f32 %v721_v2, %v721_v2  ;;  %v736_v8 = vld [vmem:[%s708_s6 + $0x38] sm:$0xff]  ;;  %v182_v9 = vmul.f32 %v728_v5, %v728_v5  ;;  %v187_v10 = vmul.f32 %v733_v7, %v733_v7  ;;  %v745_v12 = vld [vmem:[%s708_s6 + $0x10] sm:$0xff]  ;;  %v761_v19 = vld [vmem:[%s708_s6 + $0x40] sm:$0xff]  ;;  %v265_v50 = vshrl.u32 %v264_v43, 7  ;;  %s307_s14 = scalar_lea.sflag [#allocation4], %s702_s27  ;;  %s510_s16 = scalar_lea.vmem %s854_s4, 2048 }
  0x3b   : > { %v188_v11 = vmul.f32 %v736_v8, %v736_v8  ;;  %v748_v13 = vld [vmem:[%s708_s6 + $0x18] sm:$0xff]  ;;  %v751_v14 = vld [vmem:[%s708_s6 + $0x50] sm:$0xff]  ;;  %v203_v15 = vadd.f32 %v186_v4, %v185_v3  ;;  %v183_v16 = vmul.f32 %v745_v12, %v745_v12  ;;  %v764_v20 = vld [vmem:[%s708_s6 + $0x48] sm:$0xff]  ;;  %v189_v26 = vmul.f32 %v761_v19, %v761_v19  ;;  %p511_p6 = scmp.ne.s32.totalorder %s854_s4, %s510_s16  ;;  %p912_p10 = scmp.ne.s32.totalorder %s909_s21, 0 }
  0x3c   : > { %v184_v17 = vmul.f32 %v748_v13, %v748_v13  ;;  %v758_v18 = vld [vmem:[%s708_s6 + $0x58] sm:$0xff]  ;;  %v197_v21 = vadd.f32 %v182_v9, %v181_v6  ;;  %v191_v23 = vmul.f32 %v751_v14, %v751_v14  ;;  %v190_v27 = vmul.f32 %v764_v20, %v764_v20  ;;  %v775_v28 = vld [vmem:[%s708_s6 + $0x70] sm:$0xff]  ;;  %v781_v30 = vld [vmem:[%s708_s6 + $0x60] sm:$0xff]  ;;  %s581_s17 = smov [#allocation5]  }
  0x3d   : > { %204 = vadd.xlane.f32.xlu1 %v203_v15  ;;  %v206_v22 = vadd.f32 %v188_v11, %v187_v10  ;;  %v192_v24 = vmul.f32 %v758_v18, %v758_v18  ;;  %v778_v29 = vld [vmem:[%s708_s6 + $0x78] sm:$0xff]  ;;  %v784_v31 = vld [vmem:[%s708_s6 + $0x68] sm:$0xff]  ;;  %v195_v33 = vmul.f32 %v775_v28, %v775_v28  ;;  %v193_v36 = vmul.f32 %v781_v30, %v781_v30  ;;  %v262_v60 = vld [vmem:[%s904_s1] sm:$0x3]  ;;  %p512_p11 = pnand %p511_p6, %p912_p10  ;;  %s514_s19 = sshll.u32 %s581_s17, 4  ;;  %s515_s19 = int_to_ptr.vmem [resolvable:$false] %s514_s19 }
  0x3e   : > { %198 = vadd.xlane.f32.xlu0 %v197_v21  ;;  %v200_v25 = vadd.f32 %v184_v17, %v183_v16  ;;  %v196_v34 = vmul.f32 %v778_v29, %v778_v29  ;;  %v209_v35 = vadd.f32 %v190_v27, %v189_v26  ;;  %v194_v37 = vmul.f32 %v784_v31, %v784_v31  ;;  %s516_s23 = scalar_lea.vmem %s515_s19, 4096  ;;  %p517_p8 = scmp.lt.s32.totalorder %s854_s4, %s515_s19 }
  0x3f   : > { %v212_v32 = vadd.f32 %v192_v24, %v191_v23  ;;  %v266_v57 = vsub.s32 0, %v265_v50  ;;  %v270_v58 = vsub.s32 1, %v265_v50  ;;  %p513_p12 = pneg %p512_p11  ;;  %p518_p9 = scmp.lt.s32.totalorder %s516_s23, %s510_s16 }
  0x40   : > { %v218_v38 = vadd.f32 %v196_v34, %v195_v33  ;;  %v215_v39 = vadd.f32 %v194_v37, %v193_v36 }
  0x41   : > { %207 = vadd.xlane.f32.xlu1 %v206_v22  ;;  %v797_v6 = vrot.slane %v262_v60, %v266_v57  ;;  %v799_v9 = vrot.slane %v262_v60, %v270_v58  ;;  %p519_p13 = por %p518_p9, %p517_p8 }
  0x42   : > { %201 = vadd.xlane.f32.xlu0 %v200_v25 }
  0x43   : > { %p520_p1 = pnand %p519_p13, %p513_p12 }
  0x45   : > { %213 = vadd.xlane.f32.xlu1 %v212_v32 }
  0x46   : > { %210 = vadd.xlane.f32.xlu0 %v209_v35 }
  0x49   : > { %219 = vadd.xlane.f32.xlu1 %v218_v38 }
  0x4a   : > { %216 = vadd.xlane.f32.xlu0 %v215_v39 }
  0xca   : > { %v205_v40 = vpop.xlane.xlu1 %204 }
  0xcb   : > { %v224_v41 = vmul.f32 0.00390625, %v205_v40  ;;  %v199_v42 = vpop.xlane.xlu0 %198 }
  0xcc   : > { %v222_v44 = vmul.f32 0.00390625, %v199_v42 }
  0xcd   : > { %v232_v45 = vadd.f32 1e-06, %v224_v41 }
  0xce   : > { %v230_v46 = vadd.f32 1e-06, %v222_v44  ;;  %v208_v47 = vpop.xlane.xlu1 %207 }
  0xcf   : > { %464 = vrsqrt.f32 %v232_v45  ;;  %v225_v48 = vmul.f32 0.00390625, %v208_v47  ;;  %v202_v49 = vpop.xlane.xlu0 %201 }
  0xd0   : > { %466 = vrsqrt.f32 %v230_v46  ;;  %v223_v51 = vmul.f32 0.00390625, %v202_v49 }
  0xd1   : > { %v233_v52 = vadd.f32 1e-06, %v225_v48 }
  0xd2   : > { %v231_v53 = vadd.f32 1e-06, %v223_v51  ;;  %v214_v54 = vpop.xlane.xlu1 %213 }
  0xd3   : > { %468 = vrsqrt.f32 %v233_v52  ;;  %v227_v55 = vmul.f32 0.00390625, %v214_v54  ;;  %v211_v56 = vpop.xlane.xlu0 %210 }
  0xd4   : > { %470 = vrsqrt.f32 %v231_v53  ;;  %v226_v59 = vmul.f32 0.00390625, %v211_v56 }
  0xd5   : > { %v235_v61 = vadd.f32 1e-06, %v227_v55 }
  0xd6   : > { %v234_v62 = vadd.f32 1e-06, %v226_v59  ;;  %v220_v63 = vpop.xlane.xlu1 %219 }
  0xd7   : > { %472 = vrsqrt.f32 %v235_v61  ;;  %v229_v3 = vmul.f32 0.00390625, %v220_v63  ;;  %v217_v4 = vpop.xlane.xlu0 %216 }
  0xd8   : > { %474 = vrsqrt.f32 %v234_v62  ;;  %v228_v10 = vmul.f32 0.00390625, %v217_v4 }
  0xd9   : > { %v465_v11 = vpop.eup %464  ;;  %v237_v15 = vadd.f32 1e-06, %v229_v3 }
  0xda   : > { %v467_v16 = vpop.eup %466  ;;  %v250_v17 = vmul.f32 %v465_v11, %v715_v0  ;;  %v251_v21 = vmul.f32 %v465_v11, %v718_v1  ;;  %v236_v22 = vadd.f32 1e-06, %v228_v10 }
  0xdb   : > { %v246_v23 = vmul.f32 %v467_v16, %v721_v2  ;;  %v247_v24 = vmul.f32 %v467_v16, %v728_v5  ;;  %476 = vrsqrt.f32 %v237_v15 }
  0xdc   : > { %v278_v25 = vmul.f32 %v797_v6, %v250_v17  ;;  %v279_v26 = vmul.f32 %v799_v9, %v251_v21  ;;  %478 = vrsqrt.f32 %v236_v22 }
  0xdd   : > { %v469_v27 = vpop.eup %468  ;;  %v274_v32 = vmul.f32 %v797_v6, %v246_v23  ;;  %v275_v33 = vmul.f32 %v799_v9, %v247_v24 }
  0xde   : > { %v471_v34 = vpop.eup %470  ;;  %294 = vst [vmem:[%s811_s30 + $0x20] sm:$0xff] %v278_v25  ;;  %295 = vst [vmem:[%s811_s30 + $0x28] sm:$0xff] %v279_v26  ;;  %v252_v0 = vmul.f32 %v469_v27, %v733_v7  ;;  %v253_v1 = vmul.f32 %v469_v27, %v736_v8 }
  0xdf   : > { %290 = vst [vmem:[%s811_s30] sm:$0xff] %v274_v32  ;;  %291 = vst [vmem:[%s811_s30 + $0x8] sm:$0xff] %v275_v33  ;;  %v248_v2 = vmul.f32 %v471_v34, %v745_v12  ;;  %v249_v5 = vmul.f32 %v471_v34, %v748_v13 }
  0xe0   : > { %v280_v35 = vmul.f32 %v797_v6, %v252_v0  ;;  %v281_v36 = vmul.f32 %v799_v9, %v253_v1 }
  0xe1   : > { %v473_v37 = vpop.eup %472  ;;  %v276_v38 = vmul.f32 %v797_v6, %v248_v2  ;;  %v277_v7 = vmul.f32 %v799_v9, %v249_v5 }
  0xe2   : > { %v475_v39 = vpop.eup %474  ;;  %296 = vst [vmem:[%s811_s30 + $0x30] sm:$0xff] %v280_v35  ;;  %297 = vst [vmem:[%s811_s30 + $0x38] sm:$0xff] %v281_v36  ;;  %v256_v8 = vmul.f32 %v473_v37, %v751_v14  ;;  %v257_v12 = vmul.f32 %v473_v37, %v758_v18 }
  0xe3   : > { %292 = vst [vmem:[%s811_s30 + $0x10] sm:$0xff] %v276_v38  ;;  %293 = vst [vmem:[%s811_s30 + $0x18] sm:$0xff] %v277_v7  ;;  %v254_v13 = vmul.f32 %v475_v39, %v761_v19  ;;  %v255_v40 = vmul.f32 %v475_v39, %v764_v20 }
  0xe4   : > { %v284_v41 = vmul.f32 %v797_v6, %v256_v8  ;;  %v285_v42 = vmul.f32 %v799_v9, %v257_v12 }
  0xe5   : > { %v477_v43 = vpop.eup %476  ;;  %v282_v44 = vmul.f32 %v797_v6, %v254_v13  ;;  %v283_v45 = vmul.f32 %v799_v9, %v255_v40 }
  0xe6   : > { %v479_v14 = vpop.eup %478  ;;  %300 = vst [vmem:[%s811_s30 + $0x50] sm:$0xff] %v284_v41  ;;  %301 = vst [vmem:[%s811_s30 + $0x58] sm:$0xff] %v285_v42  ;;  %v260_v18 = vmul.f32 %v477_v43, %v775_v28  ;;  %v261_v19 = vmul.f32 %v477_v43, %v778_v29 }
  0xe7   : > { %298 = vst [vmem:[%s811_s30 + $0x40] sm:$0xff] %v282_v44  ;;  %299 = vst [vmem:[%s811_s30 + $0x48] sm:$0xff] %v283_v45  ;;  %v258_v20 = vmul.f32 %v479_v14, %v781_v30  ;;  %v259_v46 = vmul.f32 %v479_v14, %v784_v31 }
  0xe8   : > { %v288_v47 = vmul.f32 %v797_v6, %v260_v18  ;;  %v289_v48 = vmul.f32 %v799_v9, %v261_v19 }
  0xe9   : > { %v286_v28 = vmul.f32 %v797_v6, %v258_v20  ;;  %v287_v29 = vmul.f32 %v799_v9, %v259_v46 }
  0xea   : > { %304 = vst [vmem:[%s811_s30 + $0x70] sm:$0xff] %v288_v47  ;;  %305 = vst [vmem:[%s811_s30 + $0x78] sm:$0xff] %v289_v48 }
  0xeb   : > { %302 = vst [vmem:[%s811_s30 + $0x60] sm:$0xff] %v286_v28  ;;  %303 = vst [vmem:[%s811_s30 + $0x68] sm:$0xff] %v287_v29 }
  0xec   : > { %523 = shalt.err (!%p520_p1)
}
  0xed   : > { %s524_s24 = scalar_lea.hbm %s852_s8, 2048  ;;  %s528_s29 = scalar_lea.hbm %s905_s2, 8192 }
  0xee   : > { %p525_p3 = scmp.ne.s32.totalorder %s852_s8, %s524_s24  ;;  %p529_p0 = scmp.lt.u32.totalorder %s852_s8, %s905_s2 }
  0xef   : > { %p530_p2 = scmp.lt.u32.totalorder %s528_s29, %s524_s24  ;;  %p532_p6 = scmp.lt.u32.totalorder %s524_s24, %s852_s8 }
  0xf0   : > { %p526_p4 = pnand %p525_p3, %p912_p10 }
  0xf1   : > { %p531_p7 = por %p530_p2, %p529_p0 }
  0xf2   : > { %p527_p5 = pneg %p526_p4 }
  0xf3   : > { %p533_p11 = por %p532_p6, %p531_p7 }
  0xf5   : > { %p534_p12 = pnand %p533_p11, %p527_p5 }
  0xf7   : > { %537 = shalt.err (!%p534_p12)
}
  0xf8   : > { %s582_s20 = smov 256   ;;  %s583_s28 = smov 16  }
  0xf9   : > { %416 = dma.vmem_to_hbm [thread:$0]  (%p912_p10), %s854_s4, 2048, %s852_s8, %s307_s14, %s582_s20, %s582_s20, %s583_s28  }
  0xfa PF: > { %p427_p8 = scmp.ge.s32.totalorder %s576_s12, 2  ;;  %s336_s30 = sand.u32 1, %s564_s9  }
  0xfb   : > { %p913_p9 = scmp.ne.s32.totalorder %s910_s22, 0  ;;  %s337_s3 = scalar_lea.sflag [#allocation4], %s336_s30 }
  0xfd   : > { %p423_p13 = pnand %p427_p8, %p913_p9 }
  0xff   : > { %559 = dma.done.wait (!%p423_p13), %s337_s3, 2048  }
 0x100   : > { %561 = vsyncadd (!%p423_p13), %s337_s3, 4294965248  ;;  %p15_p1 = scmp.ge.s32.totalorder %s624_s15, 6   ;;  %s914_s9 = smov %s568_s10 }
 0x101   : > { %s915_s10 = smov %s572_s11  ;;  %s916_s11 = smov %s636_s18 }
 0x102   : > { %s917_s12 = smov %s624_s15  ;;  %17 = sbr.rel (!%p15_p1) target bundleno = 5 (0x5), region = 73 }
 0x109   :  { %342 = vsyncpa [#allocation3], 1 }
 0x10a   :  { %344 = vsyncpa [#allocation3 + $0x1], 1 }
 0x10b   :  { %345 = vsyncpa [#allocation4], 1 }
 0x10c   :  { %347 = vsyncpa [#allocation4 + $0x1], 1 }

</bundles_post_ra>
